<compile_context>
chip_gen: v7x
topology: tpu7x:2x2x1
jax: 0.10.0
libtpu: 0.0.40
codegen_flags: <defaults>
</compile_context>

<pallas_src>
import functools

import jax
import jax.numpy as jnp
from jax.experimental import pallas as pl
from jax.experimental.pallas import tpu as pltpu


def _round_up(x: int, m: int) -> int:
    return (x + m - 1) // m * m


# ---------------------------------------------------------------------------
# Kernels
# ---------------------------------------------------------------------------
def _mlp_kernel(x_ref, w1_ref, b1_ref, w2_ref, b2_ref, w3_ref, b3_ref, o_ref):
    """Whole fc1 reduction fits in one tile: fused fc1+ReLU+fc2+ReLU+fc3."""
    h1 = jnp.dot(x_ref[...], w1_ref[...], preferred_element_type=jnp.float32)
    h1 = jnp.maximum(h1 + b1_ref[...], 0.0)
    h2 = jnp.dot(h1.astype(w2_ref.dtype), w2_ref[...],
                 preferred_element_type=jnp.float32)
    h2 = jnp.maximum(h2 + b2_ref[...], 0.0)
    out = jnp.dot(h2.astype(w3_ref.dtype), w3_ref[...],
                  preferred_element_type=jnp.float32)
    o_ref[...] = (out + b3_ref[...]).astype(o_ref.dtype)


def _mlp_kernel_ktiled(x_ref, w1_ref, b1_ref, w2_ref, b2_ref, w3_ref, b3_ref,
                       o_ref, acc_ref):
    """fc1 reduction tiled over a second ("arbitrary") grid axis.  w1 streams
    through VMEM; fc2/fc3 run only on the last K step (accumulator pattern)."""
    k = pl.program_id(1)

    @pl.when(k == 0)
    def _():
        acc_ref[...] = jnp.zeros_like(acc_ref)

    acc_ref[...] += jnp.dot(x_ref[...], w1_ref[...],
                            preferred_element_type=jnp.float32)

    @pl.when(k == pl.num_programs(1) - 1)
    def _():
        h1 = jnp.maximum(acc_ref[...] + b1_ref[...], 0.0)
        h2 = jnp.dot(h1.astype(w2_ref.dtype), w2_ref[...],
                     preferred_element_type=jnp.float32)
        h2 = jnp.maximum(h2 + b2_ref[...], 0.0)
        out = jnp.dot(h2.astype(w3_ref.dtype), w3_ref[...],
                      preferred_element_type=jnp.float32)
        o_ref[...] = (out + b3_ref[...]).astype(o_ref.dtype)


# ---------------------------------------------------------------------------
# Host-side helpers
# ---------------------------------------------------------------------------
def _default_block_b() -> int:
    """Per-generation default batch tile."""
    try:
        kind = jax.devices()[0].device_kind.lower()
    except Exception:  # pragma: no cover
        return 256
    if "v5 lite" in kind or "v5e" in kind or "v5lite" in kind:
        return 128          # 4x128x128 MXU, single vst slot -> smaller LHS tile
    if "v6" in kind or "trillium" in kind:
        return 512          # 128 MiB VMEM -> amortise per-step overhead
    return 256              # v7x / default


def _choose_block_b(batch: int, preferred: int) -> int:
    """Multiple of 8, <= preferred, >= 2 grid steps when possible (v7x has two
    TensorCores), and batch-padding waste kept under ~12.5%."""
    b8 = _round_up(max(batch, 1), 8)
    if b8 <= 8:
        return b8
    cap = min(preferred, max(8, _round_up(pl.cdiv(b8, 2), 8)))
    blk = cap
    while blk > 8:
        waste = _round_up(b8, blk) - b8
        if waste * 8 <= b8:          # <= 12.5% dead rows
            break
        blk = _round_up(blk // 2, 8)
    return max(blk, 8)


def prepare_params(params):
    """One-time conversion of f32 (in,out) weights / (1,out) biases into the
    padded, bf16 layout the kernel consumes.  Call once, NOT per forward."""
    def pad2d(a, rows, cols, dtype):
        a = jnp.asarray(a, dtype)
        return jnp.pad(a, ((0, rows - a.shape[0]), (0, cols - a.shape[1])))

    in_dim, hidden = params["w1"].shape
    out_dim = params["w3"].shape[1]
    in_pad = _round_up(in_dim, 128)
    hid_pad = _round_up(hidden, 128)
    out_pad = _round_up(out_dim, 128)
    return {
        "w1": pad2d(params["w1"], in_pad, hid_pad, jnp.bfloat16),
        "b1": pad2d(params["b1"].reshape(1, -1), 1, hid_pad, jnp.float32),
        "w2": pad2d(params["w2"], hid_pad, hid_pad, jnp.bfloat16),
        "b2": pad2d(params["b2"].reshape(1, -1), 1, hid_pad, jnp.float32),
        "w3": pad2d(params["w3"], hid_pad, out_pad, jnp.bfloat16),
        "b3": pad2d(params["b3"].reshape(1, -1), 1, out_pad, jnp.float32),
    }


# ---------------------------------------------------------------------------
# Forward
# ---------------------------------------------------------------------------
@functools.partial(
    jax.jit,
    static_argnames=("out_dim", "block_b", "k_block", "single_buffer_weights"))
def mlp_forward(x, prepped, *, out_dim, block_b=None, k_block=512,
                single_buffer_weights=True):
    """x: [B, ...] float32; prepped: output of prepare_params (padded bf16)."""
    compute_dtype = jnp.bfloat16

    b = x.shape[0]
    x2d = x.reshape(b, -1)                      # mirrors x.view(x.shape[0], -1)
    in_dim = x2d.shape[1]

    w1, b1 = prepped["w1"], prepped["b1"]
    w2, b2 = prepped["w2"], prepped["b2"]
    w3, b3 = prepped["w3"], prepped["b3"]
    in_pad, hid_pad = w1.shape
    out_pad = w3.shape[1]
    assert in_dim <= in_pad and out_dim <= out_pad
    assert w2.shape == (hid_pad, hid_pad) and w3.shape[0] == hid_pad

    # ---- batch tiling (generation aware, >= 2 tiles when possible) ----
    if block_b is None:
        block_b = _default_block_b()
    block_b = _choose_block_b(b, block_b)
    b_pad = _round_up(_round_up(b, 8), block_b)
    grid_b = b_pad // block_b

    # ---- cast x to bf16; pad only if actually required ----
    x_p = x2d.astype(compute_dtype)
    pad_rows, pad_cols = b_pad - b, in_pad - in_dim
    if pad_rows or pad_cols:
        x_p = jnp.pad(x_p, ((0, pad_rows), (0, pad_cols)))

    # ---- K tiling of the fc1 reduction (keeps w1 streaming, v7x-safe) ----
    if in_pad > k_block:
        kb = max(k_block - (k_block % 128), 128)
        while in_pad % kb:          # in_pad is a multiple of 128 -> terminates
            kb -= 128
        nk = in_pad // kb
    else:
        kb, nk = in_pad, 1

    # ---- BlockSpecs ----
    def resident_spec(shape, index_map):
        # Constant-index operands stay resident in VMEM for the whole grid;
        # request a single buffer (halves their VMEM footprint).
        if single_buffer_weights:
            return pl.BlockSpec(shape, index_map, pipeline_mode=pl.Buffered(1))
        return pl.BlockSpec(shape, index_map)

    if nk == 1:
        kernel = _mlp_kernel
        grid = (grid_b,)
        dims = ("parallel",)
        const1 = lambda i: (0, 0)
        in_specs = [
            pl.BlockSpec((block_b, in_pad), lambda i: (i, 0)),   # x (streamed)
            resident_spec((in_pad, hid_pad), const1),            # w1
            resident_spec((1, hid_pad), const1),                 # b1
            resident_spec((hid_pad, hid_pad), const1),           # w2
            resident_spec((1, hid_pad), const1),                 # b2
            resident_spec((hid_pad, out_pad), const1),           # w3
            resident_spec((1, out_pad), const1),                 # b3
        ]
        out_spec = pl.BlockSpec((block_b, out_pad), lambda i: (i, 0))
        scratch = []
        w1_vmem = w1.size * 2 * (1 if single_buffer_weights else 2)
        x_tile_vmem = 2 * block_b * in_pad * 2
        acc_vmem = 0
    else:
        kernel = _mlp_kernel_ktiled
        grid = (grid_b, nk)
        dims = ("parallel", "arbitrary")
        const2 = lambda i, k: (0, 0)
        in_specs = [
            pl.BlockSpec((block_b, kb), lambda i, k: (i, k)),    # x (streamed)
            pl.BlockSpec((kb, hid_pad), lambda i, k: (k, 0)),    # w1 (streamed)
            resident_spec((1, hid_pad), const2),                 # b1
            resident_spec((hid_pad, hid_pad), const2),           # w2
            resident_spec((1, hid_pad), const2),                 # b2
            resident_spec((hid_pad, out_pad), const2),           # w3
            resident_spec((1, out_pad), const2),                 # b3
        ]
        out_spec = pl.BlockSpec((block_b, out_pad), lambda i, k: (i, 0))
        scratch = [pltpu.VMEM((block_b, hid_pad), jnp.float32)]
        w1_vmem = 2 * kb * hid_pad * 2
        x_tile_vmem = 2 * block_b * kb * 2
        acc_vmem = block_b * hid_pad * 4

    # ---- explicit VMEM budget (with headroom, capped for v7x's 64 MiB) ----
    w_bufs = 1 if single_buffer_weights else 2
    resident_vmem = w_bufs * ((w2.size + w3.size) * 2
                              + (b1.size + b2.size + b3.size) * 4)
    vmem_needed = (resident_vmem + w1_vmem + x_tile_vmem + acc_vmem
                   + 2 * block_b * out_pad * 4      # out tile (double buffered)
                   + 2 * block_b * hid_pad * 4)     # f32 h1/h2 intermediates
    vmem_limit = int(min(max(2 * vmem_needed, 32 * 1024 * 1024),
                         64 * 1024 * 1024))

    flops = 2 * b_pad * (in_pad * hid_pad + hid_pad * hid_pad
                         + hid_pad * out_pad)
    bytes_accessed = (x_p.size * 2
                      + (w1.size + w2.size + w3.size) * 2
                      + (b1.size + b2.size + b3.size) * 4
                      + b_pad * out_pad * 4)

    out_padded = pl.pallas_call(
        kernel,
        out_shape=jax.ShapeDtypeStruct((b_pad, out_pad), jnp.float32),
        grid=grid,
        in_specs=in_specs,
        out_specs=out_spec,
        scratch_shapes=scratch,
        compiler_params=pltpu.CompilerParams(
            dimension_semantics=dims,
            vmem_limit_bytes=vmem_limit),
        cost_estimate=pl.CostEstimate(
            flops=flops, transcendentals=0, bytes_accessed=bytes_accessed),
    )(x_p, w1, b1, w2, b2, w3, b3)

    return out_padded[:b, :out_dim]


def run_mlp(x, prepped, *, out_dim, block_b=None, k_block=512):
    """Prefer single-buffered resident weights; fall back to default double
    buffering if this JAX/Mosaic version rejects pipeline_mode here."""
    try:
        return jax.block_until_ready(
            mlp_forward(x, prepped, out_dim=out_dim, block_b=block_b,
                        k_block=k_block, single_buffer_weights=True))
    except Exception:
        return jax.block_until_ready(
            mlp_forward(x, prepped, out_dim=out_dim, block_b=block_b,
                        k_block=k_block, single_buffer_weights=False))


# ---------------------------------------------------------------------------
# Parameter init + pure-JAX reference
# ---------------------------------------------------------------------------
def init_params(key, input_dim, output_dim, hidden_dim=128):
    """Deterministic init mimicking nn.Linear's uniform(-1/sqrt(fan_in), ...)."""
    def linear(k, fan_in, fan_out):
        k_w, k_b = jax.random.split(k)
        bound = 1.0 / jnp.sqrt(fan_in)
        # stored as (in, out) so the kernel does x @ W (== PyTorch x @ W_pt.T)
        w = jax.random.uniform(k_w, (fan_in, fan_out), jnp.float32, -bound, bound)
        bias = jax.random.uniform(k_b, (1, fan_out), jnp.float32, -bound, bound)
        return w, bias

    k1, k2, k3 = jax.random.split(key, 3)
    w1, b1 = linear(k1, input_dim, hidden_dim)
    w2, b2 = linear(k2, hidden_dim, hidden_dim)
    w3, b3 = linear(k3, hidden_dim, output_dim)
    return {"w1": w1, "b1": b1, "w2": w2, "b2": b2, "w3": w3, "b3": b3}


def mlp_ref(x, params):
    """Pure-JAX reference using the same bf16-weights / f32-accumulate recipe."""
    x2d = x.reshape(x.shape[0], -1).astype(jnp.bfloat16)
    w1 = params["w1"].astype(jnp.bfloat16)
    w2 = params["w2"].astype(jnp.bfloat16)
    w3 = params["w3"].astype(jnp.bfloat16)
    h1 = jnp.maximum(
        jnp.dot(x2d, w1, preferred_element_type=jnp.float32) + params["b1"], 0.0)
    h2 = jnp.maximum(
        jnp.dot(h1.astype(jnp.bfloat16), w2, preferred_element_type=jnp.float32)
        + params["b2"], 0.0)
    return (jnp.dot(h2.astype(jnp.bfloat16), w3, preferred_element_type=jnp.float32)
            + params["b3"])


if __name__ == "__main__":
    key = jax.random.PRNGKey(0)
    k_x, k_p, k_x2, k_p2 = jax.random.split(key, 4)

    # --- Test 1: MNIST-like shape (single-K-step fused kernel path) ---
    B, C, H, W = 8, 1, 16, 16
    input_dim, hidden_dim, output_dim = C * H * W, 128, 10
    x = jax.random.normal(k_x, (B, C, H, W), jnp.float32)
    params = init_params(k_p, input_dim, output_dim, hidden_dim)
    prepped = prepare_params(params)            # one-time pad + bf16 cast

    out = run_mlp(x, prepped, out_dim=output_dim)
    ref = mlp_ref(x, params)
    assert out.shape == (B, output_dim), out.shape
    assert jnp.allclose(out, ref, atol=1e-2, rtol=1e-2), "mismatch (test 1)"

    # --- Test 2: larger input dim + non-multiple-of-8 batch ---
    # Exercises the K-tiled fc1 path (in_pad=1024 > k_block=512) and the
    # batch-padding / adaptive-tile logic.
    B2, C2, H2, W2 = 20, 4, 16, 16
    input_dim2, output_dim2 = C2 * H2 * W2, 10
    x2 = jax.random.normal(k_x2, (B2, C2, H2, W2), jnp.float32)
    params2 = init_params(k_p2, input_dim2, output_dim2, hidden_dim)
    prepped2 = prepare_params(params2)

    out2 = run_mlp(x2, prepped2, out_dim=output_dim2, k_block=512)
    ref2 = mlp_ref(x2, params2)
    assert out2.shape == (B2, output_dim2), out2.shape
    assert jnp.allclose(out2, ref2, atol=1e-2, rtol=1e-2), "mismatch (test 2)"

    print("KERNEL_OK")
</pallas_src>

<mosaic_0001>
module attributes {stable_mosaic.version = 11 : i64} {
  func.func @_mlp_kernel(%arg0: i32, %arg1: memref<8x256xbf16, #tpu.memory_space<vmem>>, %arg2: memref<256x128xbf16, #tpu.memory_space<vmem>>, %arg3: memref<1x128xf32, #tpu.memory_space<vmem>>, %arg4: memref<128x128xbf16, #tpu.memory_space<vmem>>, %arg5: memref<1x128xf32, #tpu.memory_space<vmem>>, %arg6: memref<128x128xbf16, #tpu.memory_space<vmem>>, %arg7: memref<1x128xf32, #tpu.memory_space<vmem>>, %arg8: memref<8x128xf32, #tpu.memory_space<vmem>>) attributes {dimension_semantics = [#tpu.dimension_semantics<parallel>], iteration_bounds = array<i64: 1>, scalar_prefetch = 0 : i64, scratch_operands = 0 : i64, tpu.core_type = #tpu.core_type<tc>, window_params = [{transform_indices = @transform_0, window_bounds = array<i64: 8, 256>}, {pipeline_mode = #tpu.pipeline_mode<synchronous>, transform_indices = @transform_1, window_bounds = array<i64: 256, 128>}, {pipeline_mode = #tpu.pipeline_mode<synchronous>, transform_indices = @transform_2, window_bounds = array<i64: 1, 128>}, {pipeline_mode = #tpu.pipeline_mode<synchronous>, transform_indices = @transform_3, window_bounds = array<i64: 128, 128>}, {pipeline_mode = #tpu.pipeline_mode<synchronous>, transform_indices = @transform_4, window_bounds = array<i64: 1, 128>}, {pipeline_mode = #tpu.pipeline_mode<synchronous>, transform_indices = @transform_5, window_bounds = array<i64: 128, 128>}, {pipeline_mode = #tpu.pipeline_mode<synchronous>, transform_indices = @transform_6, window_bounds = array<i64: 1, 128>}, {transform_indices = @transform_7, window_bounds = array<i64: 8, 128>}]} {
    %c0 = arith.constant 0 : index
    %c0_0 = arith.constant 0 : index
    %0 = vector.load %arg1[%c0, %c0_0] : memref<8x256xbf16, #tpu.memory_space<vmem>>, vector<8x256xbf16>
    %c0_1 = arith.constant 0 : index
    %c0_2 = arith.constant 0 : index
    %1 = vector.load %arg2[%c0_1, %c0_2] : memref<256x128xbf16, #tpu.memory_space<vmem>>, vector<256x128xbf16>
    %cst = arith.constant dense<0.000000e+00> : vector<8x128xf32>
    %2 = tpu.matmul %0, %1, %cst {dimension_numbers = #tpu.dot_dimension_numbers<[1], [0], [0], [1], [0, 0, 1, 1], [], []>} : vector<8x256xbf16>, vector<256x128xbf16>, vector<8x128xf32> -> vector<8x128xf32>
    %c0_3 = arith.constant 0 : index
    %c0_4 = arith.constant 0 : index
    %3 = vector.load %arg3[%c0_3, %c0_4] : memref<1x128xf32, #tpu.memory_space<vmem>>, vector<1x128xf32>
    %4 = vector.broadcast %3 : vector<1x128xf32> to vector<8x128xf32>
    %5 = arith.addf %2, %4 : vector<8x128xf32>
    %cst_5 = arith.constant 0.000000e+00 : f32
    %6 = vector.broadcast %cst_5 : f32 to vector<8x128xf32>
    %7 = arith.maximumf %5, %6 : vector<8x128xf32>
    %8 = arith.truncf %7 : vector<8x128xf32> to vector<8x128xbf16>
    %c0_6 = arith.constant 0 : index
    %c0_7 = arith.constant 0 : index
    %9 = vector.load %arg4[%c0_6, %c0_7] : memref<128x128xbf16, #tpu.memory_space<vmem>>, vector<128x128xbf16>
    %cst_8 = arith.constant dense<0.000000e+00> : vector<8x128xf32>
    %10 = tpu.matmul %8, %9, %cst_8 {dimension_numbers = #tpu.dot_dimension_numbers<[1], [0], [0], [1], [0, 0, 1, 1], [], []>} : vector<8x128xbf16>, vector<128x128xbf16>, vector<8x128xf32> -> vector<8x128xf32>
    %c0_9 = arith.constant 0 : index
    %c0_10 = arith.constant 0 : index
    %11 = vector.load %arg5[%c0_9, %c0_10] : memref<1x128xf32, #tpu.memory_space<vmem>>, vector<1x128xf32>
    %12 = vector.broadcast %11 : vector<1x128xf32> to vector<8x128xf32>
    %13 = arith.addf %10, %12 : vector<8x128xf32>
    %cst_11 = arith.constant 0.000000e+00 : f32
    %14 = vector.broadcast %cst_11 : f32 to vector<8x128xf32>
    %15 = arith.maximumf %13, %14 : vector<8x128xf32>
    %16 = arith.truncf %15 : vector<8x128xf32> to vector<8x128xbf16>
    %c0_12 = arith.constant 0 : index
    %c0_13 = arith.constant 0 : index
    %17 = vector.load %arg6[%c0_12, %c0_13] : memref<128x128xbf16, #tpu.memory_space<vmem>>, vector<128x128xbf16>
    %cst_14 = arith.constant dense<0.000000e+00> : vector<8x128xf32>
    %18 = tpu.matmul %16, %17, %cst_14 {dimension_numbers = #tpu.dot_dimension_numbers<[1], [0], [0], [1], [0, 0, 1, 1], [], []>} : vector<8x128xbf16>, vector<128x128xbf16>, vector<8x128xf32> -> vector<8x128xf32>
    %c0_15 = arith.constant 0 : index
    %c0_16 = arith.constant 0 : index
    %19 = vector.load %arg7[%c0_15, %c0_16] : memref<1x128xf32, #tpu.memory_space<vmem>>, vector<1x128xf32>
    %20 = vector.broadcast %19 : vector<1x128xf32> to vector<8x128xf32>
    %21 = arith.addf %18, %20 : vector<8x128xf32>
    %c0_17 = arith.constant 0 : index
    %c0_18 = arith.constant 0 : index
    %22 = vector.load %arg8[%c0_17, %c0_18] : memref<8x128xf32, #tpu.memory_space<vmem>>, vector<8x128xf32>
    tpu.vector_store %arg8[%c0_17, %c0_18], %21 {strides = array<i32>} : memref<8x128xf32, #tpu.memory_space<vmem>>, vector<8x128xf32>,
    return
  }
  func.func @transform_0(%arg0: i32) -> (i32, i32) {
    %c0_i32 = arith.constant 0 : i32
    %c0_i32_0 = arith.constant 0 : i32
    return %arg0, %c0_i32 : i32, i32
  }
  func.func @transform_1(%arg0: i32) -> (i32, i32) {
    %c0_i32 = arith.constant 0 : i32
    %c0_i32_0 = arith.constant 0 : i32
    %c0_i32_1 = arith.constant 0 : i32
    return %c0_i32, %c0_i32_0 : i32, i32
  }
  func.func @transform_2(%arg0: i32) -> (i32, i32) {
    %c0_i32 = arith.constant 0 : i32
    %c0_i32_0 = arith.constant 0 : i32
    %c0_i32_1 = arith.constant 0 : i32
    return %c0_i32, %c0_i32_0 : i32, i32
  }
  func.func @transform_3(%arg0: i32) -> (i32, i32) {
    %c0_i32 = arith.constant 0 : i32
    %c0_i32_0 = arith.constant 0 : i32
    %c0_i32_1 = arith.constant 0 : i32
    return %c0_i32, %c0_i32_0 : i32, i32
  }
  func.func @transform_4(%arg0: i32) -> (i32, i32) {
    %c0_i32 = arith.constant 0 : i32
    %c0_i32_0 = arith.constant 0 : i32
    %c0_i32_1 = arith.constant 0 : i32
    return %c0_i32, %c0_i32_0 : i32, i32
  }
  func.func @transform_5(%arg0: i32) -> (i32, i32) {
    %c0_i32 = arith.constant 0 : i32
    %c0_i32_0 = arith.constant 0 : i32
    %c0_i32_1 = arith.constant 0 : i32
    return %c0_i32, %c0_i32_0 : i32, i32
  }
  func.func @transform_6(%arg0: i32) -> (i32, i32) {
    %c0_i32 = arith.constant 0 : i32
    %c0_i32_0 = arith.constant 0 : i32
    %c0_i32_1 = arith.constant 0 : i32
    return %c0_i32, %c0_i32_0 : i32, i32
  }
  func.func @transform_7(%arg0: i32) -> (i32, i32) {
    %c0_i32 = arith.constant 0 : i32
    %c0_i32_0 = arith.constant 0 : i32
    return %arg0, %c0_i32 : i32, i32
  }
}

module attributes {stable_mosaic.version = 11 : i64} {
  func.func @_mlp_kernel(%arg0: i32, %arg1: memref<8x256xbf16, #tpu.memory_space<vmem>>, %arg2: memref<256x128xbf16, #tpu.memory_space<vmem>>, %arg3: memref<1x128xf32, #tpu.memory_space<vmem>>, %arg4: memref<128x128xbf16, #tpu.memory_space<vmem>>, %arg5: memref<1x128xf32, #tpu.memory_space<vmem>>, %arg6: memref<128x128xbf16, #tpu.memory_space<vmem>>, %arg7: memref<1x128xf32, #tpu.memory_space<vmem>>, %arg8: memref<8x128xf32, #tpu.memory_space<vmem>>) attributes {dimension_semantics = [#tpu.dimension_semantics<parallel>], iteration_bounds = array<i64: 1>, scalar_prefetch = 0 : i64, scratch_operands = 0 : i64, tpu.core_type = #tpu.core_type<tc>, window_params = [{transform_indices = @transform_0, window_bounds = array<i64: 8, 256>}, {pipeline_mode = #tpu.pipeline_mode<synchronous>, transform_indices = @transform_1, window_bounds = array<i64: 256, 128>}, {pipeline_mode = #tpu.pipeline_mode<synchronous>, transform_indices = @transform_2, window_bounds = array<i64: 1, 128>}, {pipeline_mode = #tpu.pipeline_mode<synchronous>, transform_indices = @transform_3, window_bounds = array<i64: 128, 128>}, {pipeline_mode = #tpu.pipeline_mode<synchronous>, transform_indices = @transform_4, window_bounds = array<i64: 1, 128>}, {pipeline_mode = #tpu.pipeline_mode<synchronous>, transform_indices = @transform_5, window_bounds = array<i64: 128, 128>}, {pipeline_mode = #tpu.pipeline_mode<synchronous>, transform_indices = @transform_6, window_bounds = array<i64: 1, 128>}, {transform_indices = @transform_7, window_bounds = array<i64: 8, 128>}]} {
    %c0 = arith.constant 0 : index
    %c0_0 = arith.constant 0 : index
    %0 = vector.load %arg1[%c0, %c0_0] : memref<8x256xbf16, #tpu.memory_space<vmem>>, vector<8x256xbf16>
    %c0_1 = arith.constant 0 : index
    %c0_2 = arith.constant 0 : index
    %1 = vector.load %arg2[%c0_1, %c0_2] : memref<256x128xbf16, #tpu.memory_space<vmem>>, vector<256x128xbf16>
    %cst = arith.constant dense<0.000000e+00> : vector<8x128xf32>
    %2 = tpu.matmul %0, %1, %cst {dimension_numbers = #tpu.dot_dimension_numbers<[1], [0], [0], [1], [0, 0, 1, 1], [], []>} : vector<8x256xbf16>, vector<256x128xbf16>, vector<8x128xf32> -> vector<8x128xf32>
    %c0_3 = arith.constant 0 : index
    %c0_4 = arith.constant 0 : index
    %3 = vector.load %arg3[%c0_3, %c0_4] : memref<1x128xf32, #tpu.memory_space<vmem>>, vector<1x128xf32>
    %4 = vector.broadcast %3 : vector<1x128xf32> to vector<8x128xf32>
    %5 = arith.addf %2, %4 : vector<8x128xf32>
    %cst_5 = arith.constant 0.000000e+00 : f32
    %6 = vector.broadcast %cst_5 : f32 to vector<8x128xf32>
    %7 = arith.maximumf %5, %6 : vector<8x128xf32>
    %8 = arith.truncf %7 : vector<8x128xf32> to vector<8x128xbf16>
    %c0_6 = arith.constant 0 : index
    %c0_7 = arith.constant 0 : index
    %9 = vector.load %arg4[%c0_6, %c0_7] : memref<128x128xbf16, #tpu.memory_space<vmem>>, vector<128x128xbf16>
    %cst_8 = arith.constant dense<0.000000e+00> : vector<8x128xf32>
    %10 = tpu.matmul %8, %9, %cst_8 {dimension_numbers = #tpu.dot_dimension_numbers<[1], [0], [0], [1], [0, 0, 1, 1], [], []>} : vector<8x128xbf16>, vector<128x128xbf16>, vector<8x128xf32> -> vector<8x128xf32>
    %c0_9 = arith.constant 0 : index
    %c0_10 = arith.constant 0 : index
    %11 = vector.load %arg5[%c0_9, %c0_10] : memref<1x128xf32, #tpu.memory_space<vmem>>, vector<1x128xf32>
    %12 = vector.broadcast %11 : vector<1x128xf32> to vector<8x128xf32>
    %13 = arith.addf %10, %12 : vector<8x128xf32>
    %cst_11 = arith.constant 0.000000e+00 : f32
    %14 = vector.broadcast %cst_11 : f32 to vector<8x128xf32>
    %15 = arith.maximumf %13, %14 : vector<8x128xf32>
    %16 = arith.truncf %15 : vector<8x128xf32> to vector<8x128xbf16>
    %c0_12 = arith.constant 0 : index
    %c0_13 = arith.constant 0 : index
    %17 = vector.load %arg6[%c0_12, %c0_13] : memref<128x128xbf16, #tpu.memory_space<vmem>>, vector<128x128xbf16>
    %cst_14 = arith.constant dense<0.000000e+00> : vector<8x128xf32>
    %18 = tpu.matmul %16, %17, %cst_14 {dimension_numbers = #tpu.dot_dimension_numbers<[1], [0], [0], [1], [0, 0, 1, 1], [], []>} : vector<8x128xbf16>, vector<128x128xbf16>, vector<8x128xf32> -> vector<8x128xf32>
    %c0_15 = arith.constant 0 : index
    %c0_16 = arith.constant 0 : index
    %19 = vector.load %arg7[%c0_15, %c0_16] : memref<1x128xf32, #tpu.memory_space<vmem>>, vector<1x128xf32>
    %20 = vector.broadcast %19 : vector<1x128xf32> to vector<8x128xf32>
    %21 = arith.addf %18, %20 : vector<8x128xf32>
    %c0_17 = arith.constant 0 : index
    %c0_18 = arith.constant 0 : index
    %22 = vector.load %arg8[%c0_17, %c0_18] : memref<8x128xf32, #tpu.memory_space<vmem>>, vector<8x128xf32>
    tpu.vector_store %arg8[%c0_17, %c0_18], %21 {strides = array<i32>} : memref<8x128xf32, #tpu.memory_space<vmem>>, vector<8x128xf32>,
    return
  }
  func.func @transform_0(%arg0: i32) -> (i32, i32) {
    %c0_i32 = arith.constant 0 : i32
    %c0_i32_0 = arith.constant 0 : i32
    return %arg0, %c0_i32 : i32, i32
  }
  func.func @transform_1(%arg0: i32) -> (i32, i32) {
    %c0_i32 = arith.constant 0 : i32
    %c0_i32_0 = arith.constant 0 : i32
    %c0_i32_1 = arith.constant 0 : i32
    return %c0_i32, %c0_i32_0 : i32, i32
  }
  func.func @transform_2(%arg0: i32) -> (i32, i32) {
    %c0_i32 = arith.constant 0 : i32
    %c0_i32_0 = arith.constant 0 : i32
    %c0_i32_1 = arith.constant 0 : i32
    return %c0_i32, %c0_i32_0 : i32, i32
  }
  func.func @transform_3(%arg0: i32) -> (i32, i32) {
    %c0_i32 = arith.constant 0 : i32
    %c0_i32_0 = arith.constant 0 : i32
    %c0_i32_1 = arith.constant 0 : i32
    return %c0_i32, %c0_i32_0 : i32, i32
  }
  func.func @transform_4(%arg0: i32) -> (i32, i32) {
    %c0_i32 = arith.constant 0 : i32
    %c0_i32_0 = arith.constant 0 : i32
    %c0_i32_1 = arith.constant 0 : i32
    return %c0_i32, %c0_i32_0 : i32, i32
  }
  func.func @transform_5(%arg0: i32) -> (i32, i32) {
    %c0_i32 = arith.constant 0 : i32
    %c0_i32_0 = arith.constant 0 : i32
    %c0_i32_1 = arith.constant 0 : i32
    return %c0_i32, %c0_i32_0 : i32, i32
  }
  func.func @transform_6(%arg0: i32) -> (i32, i32) {
    %c0_i32 = arith.constant 0 : i32
    %c0_i32_0 = arith.constant 0 : i32
    %c0_i32_1 = arith.constant 0 : i32
    return %c0_i32, %c0_i32_0 : i32, i32
  }
  func.func @transform_7(%arg0: i32) -> (i32, i32) {
    %c0_i32 = arith.constant 0 : i32
    %c0_i32_0 = arith.constant 0 : i32
    return %arg0, %c0_i32 : i32, i32
  }
}

</mosaic_0001>

<bundles_post_ra>
// kernel: mlp_forward.1
= control target key start
LH: loop header
LB: loop body
LE: loop exit
PB: predicated region body
PF: predicated region fallthrough
CT: control target
= control target key end

     0   :  { %v630_v2 = vmov 0.0   ;;  %s811_s0 = inlined_call_operand.vmem [shape: bf16[8,256], index: 0, kind: input, shape index: {}]   ;;  %s812_s1 = inlined_call_operand.vmem [shape: bf16[256,128], index: 1, kind: input, shape index: {}]   ;;  %s813_s2 = inlined_call_operand.vmem [shape: f32[1,128], index: 2, kind: input, shape index: {}]   ;;  %s814_s3 = inlined_call_operand.vmem [shape: bf16[128,128], index: 3, kind: input, shape index: {}]   ;;  %s815_s4 = inlined_call_operand.vmem [shape: f32[1,128], index: 4, kind: input, shape index: {}]   ;;  %s816_s5 = inlined_call_operand.vmem [shape: bf16[128,128], index: 5, kind: input, shape index: {}]   ;;  %s817_s6 = inlined_call_operand.vmem [shape: f32[1,128], index: 6, kind: input, shape index: {}]   ;;  %s818_s7 = inlined_call_operand.hbm [shape: f32[8,128], index: 7, kind: output, shape index: {}]  }
   0x1   :  { %v572_v0 = vld [vmem:[%s812_s1 + $0x40] sm:$0xff]   ;;  %529 = vmatprep.subr.bf16.mxu1 %v630_v2  ;;  %v574_v3 = vld [vmem:[%s812_s1 + $0x48] sm:$0xff]   ;;  %v576_v5 = vld [vmem:[%s812_s1 + $0x50] sm:$0xff]  }
   0x2   :  { %v573_v1 = vld [vmem:[%s812_s1] sm:$0xff]   ;;  %489 = vmatprep.subr.bf16.mxu0 %v572_v0  ;;  %v575_v4 = vld [vmem:[%s812_s1 + $0x8] sm:$0xff]   ;;  %v577_v6 = vld [vmem:[%s812_s1 + $0x10] sm:$0xff]  }
   0x3   :  { %490 = vmatpush3.bf16.msra.mxu0 %v573_v1  ;;  %v578_v7 = vld [vmem:[%s812_s1 + $0x58] sm:$0xff]   ;;  %v580_v9 = vld [vmem:[%s812_s1 + $0x60] sm:$0xff]   ;;  %v582_v11 = vld [vmem:[%s812_s1 + $0x68] sm:$0xff]  }
   0x4   :  { %491 = vmatprep.subr.bf16.mxu0 %v574_v3  ;;  %v579_v8 = vld [vmem:[%s812_s1 + $0x18] sm:$0xff]   ;;  %v581_v10 = vld [vmem:[%s812_s1 + $0x20] sm:$0xff]   ;;  %v583_v15 = vld [vmem:[%s812_s1 + $0x28] sm:$0xff]  }
   0x5   :  { %v28_v12 = vld [vmem:[%s811_s0] sm:$0xff]  ;;  %v584_v16 = vld [vmem:[%s812_s1 + $0x70] sm:$0xff]   ;;  %v591_v17 = vld [vmem:[%s814_s3 + $0x8] sm:$0xff]  }
   0x6   :  { %v454_v13 = vcombine.high %v28_v12, %v28_v12  ;;  %v590_v14 = vld [vmem:[%s814_s3] sm:$0xff]   ;;  %v585_v18 = vld [vmem:[%s812_s1 + $0x30] sm:$0xff]   ;;  %v586_v19 = vld [vmem:[%s812_s1 + $0x78] sm:$0xff]  }
   0x7   :  { %492 = vmatpush3.bf16.msra.mxu0 %v575_v4  ;;  %530 = vmatpush3.bf16.msra.mxu1 %v590_v14  ;;  %v592_v20 = vld [vmem:[%s814_s3 + $0x10] sm:$0xff]   ;;  %v587_v21 = vld [vmem:[%s812_s1 + $0x38] sm:$0xff]  }
   0x8   :  { %493 = vmatprep.subr.bf16.mxu0 %v576_v5  ;;  %203 = vmatprep.mubr.bf16.mxu0 %v454_v13  ;;  %v593_v22 = vld [vmem:[%s814_s3 + $0x18] sm:$0xff]  }
   0x9   :  { %531 = vmatprep.subr.bf16.mxu1 %v630_v2 }
   0xb   :  { %494 = vmatpush3.bf16.msra.mxu0 %v577_v6  ;;  %532 = vmatpush3.bf16.msra.mxu1 %v591_v17 }
   0xc   :  { %495 = vmatprep.subr.bf16.mxu0 %v578_v7  ;;  %533 = vmatprep.subr.bf16.mxu1 %v630_v2 }
   0xf   :  { %496 = vmatpush3.bf16.msra.mxu0 %v579_v8  ;;  %534 = vmatpush3.bf16.msra.mxu1 %v592_v20 }
  0x10   :  { %497 = vmatprep.subr.bf16.mxu0 %v580_v9  ;;  %535 = vmatprep.subr.bf16.mxu1 %v630_v2 }
  0x13   :  { %498 = vmatpush3.bf16.msra.mxu0 %v581_v10 }
  0x14   :  { %499 = vmatprep.subr.bf16.mxu0 %v582_v11 }
  0x17   :  { %500 = vmatpush3.bf16.msra.mxu0 %v583_v15 }
  0x18   :  { %501 = vmatprep.subr.bf16.mxu0 %v584_v16 }
  0x1b   :  { %502 = vmatpush3.bf16.msra.mxu0 %v585_v18 }
  0x1c   :  { %503 = vmatprep.subr.bf16.mxu0 %v586_v19 }
  0x1d   :  { %12 = vsyncpa [#allocation3], 0  ;;  %v453_v23 = vcombine.low %v28_v12, %v28_v12  ;;  %536 = vmatpush3.bf16.msra.mxu1 %v593_v22  ;;  %v594_v24 = vld [vmem:[%s814_s3 + $0x20] sm:$0xff]   ;;  %v595_v25 = vld [vmem:[%s814_s3 + $0x28] sm:$0xff]   ;;  %vm631_vm0 = vmmov 0   ;;  %s632_s21 = smov [#allocation2]  }
  0x1e   :  { %537 = vmatprep.subr.bf16.mxu1 %v630_v2  ;;  %v596_v26 = vld [vmem:[%s814_s3 + $0x30] sm:$0xff]   ;;  %v597_v27 = vld [vmem:[%s814_s3 + $0x38] sm:$0xff]   ;;  %545 = vmatprep.mubr.msk.bf16.mxu1 %vm631_vm0, %v630_v2  ;;  %v598_v28 = vld [vmem:[%s816_s5] sm:$0xff]   ;;  %s444_s22 = sshll.u32 %s632_s21, 4  ;;  %s445_s22 = int_to_ptr.vmem [resolvable:$true] %s444_s22 }
  0x1f   :  { %504 = vmatpush3.bf16.msra.mxu0 %v587_v21  ;;  %v599_v29 = vld [vmem:[%s816_s5 + $0x8] sm:$0xff]   ;;  %v600_v30 = vld [vmem:[%s816_s5 + $0x10] sm:$0xff]   ;;  %v601_v31 = vld [vmem:[%s816_s5 + $0x18] sm:$0xff]   ;;  %p611_p1 = scmp.lt.s32.totalorder %s445_s22, %s445_s22 }
  0x20   :  { %549 = vmatprep.subr.bf16.mxu0 %v630_v2  ;;  %v602_v32 = vld [vmem:[%s816_s5 + $0x20] sm:$0xff]   ;;  %v603_v33 = vld [vmem:[%s816_s5 + $0x28] sm:$0xff]   ;;  %v604_v43 = vld [vmem:[%s816_s5 + $0x30] sm:$0xff]  }
  0x21   :  { %538 = vmatpush3.bf16.msra.mxu1 %v594_v24  ;;  %v452_v35 = vld [vmem:[%s813_s2] ss:$0 sm:$0xff]  ;;  %v605_v44 = vld [vmem:[%s816_s5 + $0x38] sm:$0xff]  }
  0x22   :  { %204 = vmatmul.mubr.bf16.vlgmr.msra.gmra.mrb[0].mxu0 %v453_v23  ;;  %539 = vmatprep.subr.bf16.mxu1 %v630_v2  ;;  %v471_v45 = vld [vmem:[%s815_s4] ss:$0 sm:$0xff]  ;;  %s606_s4 = scalar_lea.vmem %s445_s22, 128 }
  0x23   :  { %565 = vmatprep.mubr.msk.bf16.mxu0 %vm631_vm0, %v630_v2  ;;  %550 = vmatpush3.bf16.msra.mxu0 %v598_v28  ;;  %v480_v53 = vld [vmem:[%s817_s6] ss:$0 sm:$0xff]  ;;  %p607_p0 = scmp.ne.s32.totalorder %s445_s22, %s606_s4  ;;  %p612_p2 = scmp.lt.s32.totalorder %s606_s4, %s606_s4 }
  0x24   :  { %551 = vmatprep.subr.bf16.mxu0 %v630_v2 }
  0x25   :  { %540 = vmatpush3.bf16.msra.mxu1 %v595_v25  ;;  %p613_p3 = por %p612_p2, %p611_p1 }
  0x26   :  { %541 = vmatprep.subr.bf16.mxu1 %v630_v2 }
  0x27   :  { %552 = vmatpush3.bf16.msra.mxu0 %v599_v29  ;;  %p614_p4 = pnand %p613_p3, %p607_p0 }
  0x28   :  { %553 = vmatprep.subr.bf16.mxu0 %v630_v2 }
  0x29   :  { %542 = vmatpush3.bf16.msra.mxu1 %v596_v26 }
  0x2a   :  { %543 = vmatprep.subr.bf16.mxu1 %v630_v2 }
  0x2b   :  { %554 = vmatpush3.bf16.msra.mxu0 %v600_v30 }
  0x2c   :  { %555 = vmatprep.subr.bf16.mxu0 %v630_v2 }
  0x2d   :  { %544 = vmatpush3.bf16.msra.mxu1 %v597_v27 }
  0x2f   :  { %556 = vmatpush3.bf16.msra.mxu0 %v601_v31 }
  0x30   :  { %557 = vmatprep.subr.bf16.mxu0 %v630_v2 }
  0x33   :  { %558 = vmatpush3.bf16.msra.mxu0 %v602_v32 }
  0x34   :  { %559 = vmatprep.subr.bf16.mxu0 %v630_v2 }
  0x37   :  { %560 = vmatpush3.bf16.msra.mxu0 %v603_v33 }
  0x38   :  { %561 = vmatprep.subr.bf16.mxu0 %v630_v2 }
  0x3b   :  { %562 = vmatpush3.bf16.msra.mxu0 %v604_v43 }
  0x3c   :  { %563 = vmatprep.subr.bf16.mxu0 %v630_v2 }
  0x3f   :  { %564 = vmatpush3.bf16.msra.mxu0 %v605_v44 }
  0xf5   :  { %v505_v34 = vpop.f32.mrb[0].mxu0 }
  0xf6   :  { %v506_v36 = vpop.f32.mrb[1].mxu0 }
  0xf7   :  { %v507_v37 = vadd.f32 %v506_v36, %v505_v34  ;;  %v508_v38 = vpop.f32.mrb[2].mxu0 }
  0xf8   :  { %v509_v39 = vpop.f32.mrb[3].mxu0 }
  0xf9   :  { %v206_v40 = vadd.f32 %v507_v37, %v452_v35 }
  0xfb   :  { %v211_v41 = vmax.f32 %v206_v40, 0.0 }
  0xfd   :  { %v212_v42 = vpack.c.bf16 %v211_v41, %v211_v41 }
  0xff   :  { %546 = vmatmul.mubr.bf16.vlgmr.msra.gmra.mrb[0].mxu1 %v212_v42 }
 0x1d2   :  { %v318_v46 = vpop.f32.mrb[0].mxu1 }
 0x1d3   :  { %v319_v47 = vadd.f32 %v471_v45, %v318_v46  ;;  %v547_v48 = vpop.f32.mrb[1].mxu1 }
 0x1d4   :  { %v321_v49 = vpop.f32.mrb[2].mxu1 }
 0x1d5   :  { %v324_v50 = vmax.f32 %v319_v47, 0.0  ;;  %v548_v51 = vpop.f32.mrb[3].mxu1 }
 0x1d7   :  { %v325_v52 = vpack.c.bf16 %v324_v50, %v324_v50 }
 0x1d9   :  { %566 = vmatmul.mubr.bf16.vlgmr.msra.gmra.mrb[4].mxu0 %v325_v52 }
 0x2ac   :  { %v431_v54 = vpop.f32.mrb[4].mxu0 }
 0x2ad   :  { %v432_v55 = vadd.f32 %v480_v53, %v431_v54  ;;  %v567_v56 = vpop.f32.mrb[5].mxu0 }
 0x2ae   :  { %v434_v57 = vpop.f32.mrb[6].mxu0 }
 0x2af   :  { %437 = vst [vmem:[#allocation2] sm:$0xff] %v432_v55  ;;  %v568_v58 = vpop.f32.mrb[7].mxu0 }
 0x2b0   :  { %617 = shalt.err (!%p614_p4)
}
 0x2b1   :  { %s618_s6 = scalar_lea.hbm %s818_s7, 128 }
 0x2b2   :  { %p619_p5 = scmp.ne.s32.totalorder %s818_s7, %s618_s6  ;;  %p622_p6 = scmp.lt.u32.totalorder %s618_s6, %s818_s7 }
 0x2b4   :  { %p624_p7 = pnand %p622_p6, %p619_p5 }
 0x2b6   :  { %627 = shalt.err (!%p624_p7)
}
 0x2b7   :  { %447 = dma.vmem_to_hbm [thread:$0]  %s445_s22, 128, %s818_s7, [#allocation3]  }
 0x2b8   :  { %628 = dma.done.wait [#allocation3], 128  }
 0x2b9   :  { %629 = vsyncadd [#allocation3], 4294967168 }
 0x2ba   :  { %451 = vsyncpa [#allocation3], 1 }

// kernel: mlp_forward.1
= control target key start
LH: loop header
LB: loop body
LE: loop exit
PB: predicated region body
PF: predicated region fallthrough
CT: control target
= control target key end

     0   :  { %v630_v2 = vmov 0.0   ;;  %s811_s0 = inlined_call_operand.vmem [shape: bf16[8,256], index: 0, kind: input, shape index: {}]   ;;  %s812_s1 = inlined_call_operand.vmem [shape: bf16[256,128], index: 1, kind: input, shape index: {}]   ;;  %s813_s2 = inlined_call_operand.vmem [shape: f32[1,128], index: 2, kind: input, shape index: {}]   ;;  %s814_s3 = inlined_call_operand.vmem [shape: bf16[128,128], index: 3, kind: input, shape index: {}]   ;;  %s815_s4 = inlined_call_operand.vmem [shape: f32[1,128], index: 4, kind: input, shape index: {}]   ;;  %s816_s5 = inlined_call_operand.vmem [shape: bf16[128,128], index: 5, kind: input, shape index: {}]   ;;  %s817_s6 = inlined_call_operand.vmem [shape: f32[1,128], index: 6, kind: input, shape index: {}]   ;;  %s818_s7 = inlined_call_operand.hbm [shape: f32[8,128], index: 7, kind: output, shape index: {}]  }
   0x1   :  { %v572_v0 = vld [vmem:[%s812_s1 + $0x40] sm:$0xff]   ;;  %529 = vmatprep.subr.bf16.mxu1 %v630_v2  ;;  %v574_v3 = vld [vmem:[%s812_s1 + $0x48] sm:$0xff]   ;;  %v576_v5 = vld [vmem:[%s812_s1 + $0x50] sm:$0xff]  }
   0x2   :  { %v573_v1 = vld [vmem:[%s812_s1] sm:$0xff]   ;;  %489 = vmatprep.subr.bf16.mxu0 %v572_v0  ;;  %v575_v4 = vld [vmem:[%s812_s1 + $0x8] sm:$0xff]   ;;  %v577_v6 = vld [vmem:[%s812_s1 + $0x10] sm:$0xff]  }
   0x3   :  { %490 = vmatpush3.bf16.msra.mxu0 %v573_v1  ;;  %v578_v7 = vld [vmem:[%s812_s1 + $0x58] sm:$0xff]   ;;  %v580_v9 = vld [vmem:[%s812_s1 + $0x60] sm:$0xff]   ;;  %v582_v11 = vld [vmem:[%s812_s1 + $0x68] sm:$0xff]  }
   0x4   :  { %491 = vmatprep.subr.bf16.mxu0 %v574_v3  ;;  %v579_v8 = vld [vmem:[%s812_s1 + $0x18] sm:$0xff]   ;;  %v581_v10 = vld [vmem:[%s812_s1 + $0x20] sm:$0xff]   ;;  %v583_v15 = vld [vmem:[%s812_s1 + $0x28] sm:$0xff]  }
   0x5   :  { %v28_v12 = vld [vmem:[%s811_s0] sm:$0xff]  ;;  %v584_v16 = vld [vmem:[%s812_s1 + $0x70] sm:$0xff]   ;;  %v591_v17 = vld [vmem:[%s814_s3 + $0x8] sm:$0xff]  }
   0x6   :  { %v454_v13 = vcombine.high %v28_v12, %v28_v12  ;;  %v590_v14 = vld [vmem:[%s814_s3] sm:$0xff]   ;;  %v585_v18 = vld [vmem:[%s812_s1 + $0x30] sm:$0xff]   ;;  %v586_v19 = vld [vmem:[%s812_s1 + $0x78] sm:$0xff]  }
   0x7   :  { %492 = vmatpush3.bf16.msra.mxu0 %v575_v4  ;;  %530 = vmatpush3.bf16.msra.mxu1 %v590_v14  ;;  %v592_v20 = vld [vmem:[%s814_s3 + $0x10] sm:$0xff]   ;;  %v587_v21 = vld [vmem:[%s812_s1 + $0x38] sm:$0xff]  }
   0x8   :  { %493 = vmatprep.subr.bf16.mxu0 %v576_v5  ;;  %203 = vmatprep.mubr.bf16.mxu0 %v454_v13  ;;  %v593_v22 = vld [vmem:[%s814_s3 + $0x18] sm:$0xff]  }
   0x9   :  { %531 = vmatprep.subr.bf16.mxu1 %v630_v2 }
   0xb   :  { %494 = vmatpush3.bf16.msra.mxu0 %v577_v6  ;;  %532 = vmatpush3.bf16.msra.mxu1 %v591_v17 }
   0xc   :  { %495 = vmatprep.subr.bf16.mxu0 %v578_v7  ;;  %533 = vmatprep.subr.bf16.mxu1 %v630_v2 }
   0xf   :  { %496 = vmatpush3.bf16.msra.mxu0 %v579_v8  ;;  %534 = vmatpush3.bf16.msra.mxu1 %v592_v20 }
  0x10   :  { %497 = vmatprep.subr.bf16.mxu0 %v580_v9  ;;  %535 = vmatprep.subr.bf16.mxu1 %v630_v2 }
  0x13   :  { %498 = vmatpush3.bf16.msra.mxu0 %v581_v10 }
  0x14   :  { %499 = vmatprep.subr.bf16.mxu0 %v582_v11 }
  0x17   :  { %500 = vmatpush3.bf16.msra.mxu0 %v583_v15 }
  0x18   :  { %501 = vmatprep.subr.bf16.mxu0 %v584_v16 }
  0x1b   :  { %502 = vmatpush3.bf16.msra.mxu0 %v585_v18 }
  0x1c   :  { %503 = vmatprep.subr.bf16.mxu0 %v586_v19 }
  0x1d   :  { %12 = vsyncpa [#allocation3], 0  ;;  %v453_v23 = vcombine.low %v28_v12, %v28_v12  ;;  %536 = vmatpush3.bf16.msra.mxu1 %v593_v22  ;;  %v594_v24 = vld [vmem:[%s814_s3 + $0x20] sm:$0xff]   ;;  %v595_v25 = vld [vmem:[%s814_s3 + $0x28] sm:$0xff]   ;;  %vm631_vm0 = vmmov 0   ;;  %s632_s21 = smov [#allocation2]  }
  0x1e   :  { %537 = vmatprep.subr.bf16.mxu1 %v630_v2  ;;  %v596_v26 = vld [vmem:[%s814_s3 + $0x30] sm:$0xff]   ;;  %v597_v27 = vld [vmem:[%s814_s3 + $0x38] sm:$0xff]   ;;  %545 = vmatprep.mubr.msk.bf16.mxu1 %vm631_vm0, %v630_v2  ;;  %v598_v28 = vld [vmem:[%s816_s5] sm:$0xff]   ;;  %s444_s22 = sshll.u32 %s632_s21, 4  ;;  %s445_s22 = int_to_ptr.vmem [resolvable:$true] %s444_s22 }
  0x1f   :  { %504 = vmatpush3.bf16.msra.mxu0 %v587_v21  ;;  %v599_v29 = vld [vmem:[%s816_s5 + $0x8] sm:$0xff]   ;;  %v600_v30 = vld [vmem:[%s816_s5 + $0x10] sm:$0xff]   ;;  %v601_v31 = vld [vmem:[%s816_s5 + $0x18] sm:$0xff]   ;;  %p611_p1 = scmp.lt.s32.totalorder %s445_s22, %s445_s22 }
  0x20   :  { %549 = vmatprep.subr.bf16.mxu0 %v630_v2  ;;  %v602_v32 = vld [vmem:[%s816_s5 + $0x20] sm:$0xff]   ;;  %v603_v33 = vld [vmem:[%s816_s5 + $0x28] sm:$0xff]   ;;  %v604_v43 = vld [vmem:[%s816_s5 + $0x30] sm:$0xff]  }
  0x21   :  { %538 = vmatpush3.bf16.msra.mxu1 %v594_v24  ;;  %v452_v35 = vld [vmem:[%s813_s2] ss:$0 sm:$0xff]  ;;  %v605_v44 = vld [vmem:[%s816_s5 + $0x38] sm:$0xff]  }
  0x22   :  { %204 = vmatmul.mubr.bf16.vlgmr.msra.gmra.mrb[0].mxu0 %v453_v23  ;;  %539 = vmatprep.subr.bf16.mxu1 %v630_v2  ;;  %v471_v45 = vld [vmem:[%s815_s4] ss:$0 sm:$0xff]  ;;  %s606_s4 = scalar_lea.vmem %s445_s22, 128 }
  0x23   :  { %565 = vmatprep.mubr.msk.bf16.mxu0 %vm631_vm0, %v630_v2  ;;  %550 = vmatpush3.bf16.msra.mxu0 %v598_v28  ;;  %v480_v53 = vld [vmem:[%s817_s6] ss:$0 sm:$0xff]  ;;  %p607_p0 = scmp.ne.s32.totalorder %s445_s22, %s606_s4  ;;  %p612_p2 = scmp.lt.s32.totalorder %s606_s4, %s606_s4 }
  0x24   :  { %551 = vmatprep.subr.bf16.mxu0 %v630_v2 }
  0x25   :  { %540 = vmatpush3.bf16.msra.mxu1 %v595_v25  ;;  %p613_p3 = por %p612_p2, %p611_p1 }
  0x26   :  { %541 = vmatprep.subr.bf16.mxu1 %v630_v2 }
  0x27   :  { %552 = vmatpush3.bf16.msra.mxu0 %v599_v29  ;;  %p614_p4 = pnand %p613_p3, %p607_p0 }
  0x28   :  { %553 = vmatprep.subr.bf16.mxu0 %v630_v2 }
  0x29   :  { %542 = vmatpush3.bf16.msra.mxu1 %v596_v26 }
  0x2a   :  { %543 = vmatprep.subr.bf16.mxu1 %v630_v2 }
  0x2b   :  { %554 = vmatpush3.bf16.msra.mxu0 %v600_v30 }
  0x2c   :  { %555 = vmatprep.subr.bf16.mxu0 %v630_v2 }
  0x2d   :  { %544 = vmatpush3.bf16.msra.mxu1 %v597_v27 }
  0x2f   :  { %556 = vmatpush3.bf16.msra.mxu0 %v601_v31 }
  0x30   :  { %557 = vmatprep.subr.bf16.mxu0 %v630_v2 }
  0x33   :  { %558 = vmatpush3.bf16.msra.mxu0 %v602_v32 }
  0x34   :  { %559 = vmatprep.subr.bf16.mxu0 %v630_v2 }
  0x37   :  { %560 = vmatpush3.bf16.msra.mxu0 %v603_v33 }
  0x38   :  { %561 = vmatprep.subr.bf16.mxu0 %v630_v2 }
  0x3b   :  { %562 = vmatpush3.bf16.msra.mxu0 %v604_v43 }
  0x3c   :  { %563 = vmatprep.subr.bf16.mxu0 %v630_v2 }
  0x3f   :  { %564 = vmatpush3.bf16.msra.mxu0 %v605_v44 }
  0xf5   :  { %v505_v34 = vpop.f32.mrb[0].mxu0 }
  0xf6   :  { %v506_v36 = vpop.f32.mrb[1].mxu0 }
  0xf7   :  { %v507_v37 = vadd.f32 %v506_v36, %v505_v34  ;;  %v508_v38 = vpop.f32.mrb[2].mxu0 }
  0xf8   :  { %v509_v39 = vpop.f32.mrb[3].mxu0 }
  0xf9   :  { %v206_v40 = vadd.f32 %v507_v37, %v452_v35 }
  0xfb   :  { %v211_v41 = vmax.f32 %v206_v40, 0.0 }
  0xfd   :  { %v212_v42 = vpack.c.bf16 %v211_v41, %v211_v41 }
  0xff   :  { %546 = vmatmul.mubr.bf16.vlgmr.msra.gmra.mrb[0].mxu1 %v212_v42 }
 0x1d2   :  { %v318_v46 = vpop.f32.mrb[0].mxu1 }
 0x1d3   :  { %v319_v47 = vadd.f32 %v471_v45, %v318_v46  ;;  %v547_v48 = vpop.f32.mrb[1].mxu1 }
 0x1d4   :  { %v321_v49 = vpop.f32.mrb[2].mxu1 }
 0x1d5   :  { %v324_v50 = vmax.f32 %v319_v47, 0.0  ;;  %v548_v51 = vpop.f32.mrb[3].mxu1 }
 0x1d7   :  { %v325_v52 = vpack.c.bf16 %v324_v50, %v324_v50 }
 0x1d9   :  { %566 = vmatmul.mubr.bf16.vlgmr.msra.gmra.mrb[4].mxu0 %v325_v52 }
 0x2ac   :  { %v431_v54 = vpop.f32.mrb[4].mxu0 }
 0x2ad   :  { %v432_v55 = vadd.f32 %v480_v53, %v431_v54  ;;  %v567_v56 = vpop.f32.mrb[5].mxu0 }
 0x2ae   :  { %v434_v57 = vpop.f32.mrb[6].mxu0 }
 0x2af   :  { %437 = vst [vmem:[#allocation2] sm:$0xff] %v432_v55  ;;  %v568_v58 = vpop.f32.mrb[7].mxu0 }
 0x2b0   :  { %617 = shalt.err (!%p614_p4)
}
 0x2b1   :  { %s618_s6 = scalar_lea.hbm %s818_s7, 128 }
 0x2b2   :  { %p619_p5 = scmp.ne.s32.totalorder %s818_s7, %s618_s6  ;;  %p622_p6 = scmp.lt.u32.totalorder %s618_s6, %s818_s7 }
 0x2b4   :  { %p624_p7 = pnand %p622_p6, %p619_p5 }
 0x2b6   :  { %627 = shalt.err (!%p624_p7)
}
 0x2b7   :  { %447 = dma.vmem_to_hbm [thread:$0]  %s445_s22, 128, %s818_s7, [#allocation3]  }
 0x2b8   :  { %628 = dma.done.wait [#allocation3], 128  }
 0x2b9   :  { %629 = vsyncadd [#allocation3], 4294967168 }
 0x2ba   :  { %451 = vsyncpa [#allocation3], 1 }

</bundles_post_ra>
